<compile_context>
chip_gen: v6e
topology: v6e:2x2x1
jax: 0.10.0
libtpu: 0.0.40
codegen_flags: <defaults>
</compile_context>

<pallas_src>
import functools
import math

import jax
import jax.numpy as jnp
from jax.experimental import pallas as pl
from jax.experimental.pallas import tpu as pltpu

BN_EPS = 1e-5
LANE = 128      # feature dims padded to a multiple of this (lane-dense)
SUBLANE = 8     # flattened row dim padded to a multiple of this


def _round_up(v, m):
    return ((v + m - 1) // m) * m


def _vmem_spec():
    return pl.BlockSpec(memory_space=pltpu.MemorySpace.VMEM)


# ----------------------------------------------------------------------------
# Fused kernel: whole MLP on one VMEM-resident [n_pad, *] block.
# ----------------------------------------------------------------------------
def _build_fused_mlp_kernel(n_valid, n_pad, n_hidden, matmul_dtype):
    """Builds kernel(refs...) = [x, (w, gamma, beta)*n_hidden, w_fc, b_fc, o]."""

    def kernel(*refs):
        x_ref = refs[0]
        o_ref = refs[-1]

        inv_n = jnp.float32(1.0 / n_valid)
        if n_pad > n_valid:
            # Mask padded rows out of the batch statistics.
            row_ids = jax.lax.broadcasted_iota(jnp.int32, (n_pad, 1), 0)
            row_mask = (row_ids < n_valid).astype(jnp.float32)
        else:
            row_mask = None

        h = x_ref[...]
        idx = 1
        for _ in range(n_hidden):
            w = refs[idx][...]
            gamma = refs[idx + 1][...]
            beta = refs[idx + 2][...]
            idx += 3

            # Linear (bias omitted: cancelled by the BN mean subtraction).
            y = jnp.dot(h.astype(matmul_dtype), w.astype(matmul_dtype),
                        preferred_element_type=jnp.float32)

            # BatchNorm1d (biased batch stats over valid rows), folded into a
            # single scale/shift FMA.  Epilogue stays in f32 on all chips.
            ym = y if row_mask is None else y * row_mask
            mean = jnp.sum(ym, axis=0, keepdims=True) * inv_n
            d = y - mean
            d2 = d * d if row_mask is None else (d * d) * row_mask
            var = jnp.sum(d2, axis=0, keepdims=True) * inv_n
            scale = jax.lax.rsqrt(var + BN_EPS) * gamma
            shift = beta - mean * scale

            # ReLU; dropout = identity (eval mode).
            h = jnp.maximum(y * scale + shift, 0.0)

        w_fc = refs[idx][...]
        b_fc = refs[idx + 1][...]
        out = jnp.dot(h.astype(matmul_dtype), w_fc.astype(matmul_dtype),
                      preferred_element_type=jnp.float32) + b_fc
        o_ref[...] = out.astype(o_ref.dtype)

    return kernel


# ----------------------------------------------------------------------------
# Wrapper: single jit, single pallas_call.
# ----------------------------------------------------------------------------
@functools.partial(jax.jit, static_argnames=("out_dims", "matmul_dtype"))
def mlp_forward(x, padded_params, out_dims, matmul_dtype=jnp.float32):
    """x: [..., D_in]  ->  [..., out_dims]   (padded_params from pad_params)."""
    lead_shape = x.shape[:-1]
    d_in = x.shape[-1]
    n = math.prod(lead_shape) if lead_shape else 1

    layers = padded_params["layers"]
    w_fc = padded_params["fc"]["w"]
    b_fc = padded_params["fc"]["b"]

    d0_pad = layers[0]["w"].shape[0] if layers else w_fc.shape[0]
    h_pad = layers[0]["w"].shape[1] if layers else d0_pad
    dout_pad = w_fc.shape[1]
    n_pad = _round_up(max(n, 1), SUBLANE)

    x2 = x.reshape(n, d_in)
    x2 = jnp.pad(x2, ((0, n_pad - n), (0, d0_pad - d_in)))

    operands = [x2]
    for lp in layers:
        operands += [lp["w"], lp["gamma"], lp["beta"]]
    operands += [w_fc, b_fc]

    # Scoped-VMEM budget with headroom (everything resident, no grid).
    # Clamped to 64 MiB so the request is valid on v7x as well as v5e/v6e.
    op_bytes = sum(math.prod(a.shape) * a.dtype.itemsize for a in operands)
    act_bytes = 4 * n_pad * (2 * h_pad + dout_pad)
    vmem_limit = int(min(max(2 * (op_bytes + act_bytes), 32 * 1024 * 1024),
                         64 * 1024 * 1024))

    kernel = _build_fused_mlp_kernel(n, n_pad, len(layers), matmul_dtype)
    out = pl.pallas_call(
        kernel,
        out_shape=jax.ShapeDtypeStruct((n_pad, dout_pad), jnp.float32),
        in_specs=[_vmem_spec()] * len(operands),
        out_specs=_vmem_spec(),
        compiler_params=pltpu.CompilerParams(vmem_limit_bytes=vmem_limit),
    )(*operands)

    out = out[:n, :out_dims]
    return out.reshape(lead_shape + (out_dims,))


# ----------------------------------------------------------------------------
# Parameter init (PyTorch-equivalent layout) + one-time padding.
# ----------------------------------------------------------------------------
def init_mlp_params(key, n_layers, in_dims, hidden_dims, out_dims):
    params = {"layers": []}
    d_in = in_dims
    for _ in range(n_layers - 1):
        key, kw, kb = jax.random.split(key, 3)
        bound = 1.0 / math.sqrt(d_in)
        # nn.Linear weight has shape [out, in]; store transposed [in, out].
        w = jax.random.uniform(kw, (hidden_dims, d_in), jnp.float32, -bound, bound)
        b = jax.random.uniform(kb, (hidden_dims,), jnp.float32, -bound, bound)
        params["layers"].append({
            "w_t": jnp.asarray(w.T),
            "b": b,
            # BatchNorm1d affine params (PyTorch init: gamma=1, beta=0).
            "gamma": jnp.ones((hidden_dims,), jnp.float32),
            "beta": jnp.zeros((hidden_dims,), jnp.float32),
        })
        d_in = hidden_dims

    key, kw, kb = jax.random.split(key, 3)
    bound = 1.0 / math.sqrt(hidden_dims)
    w = jax.random.uniform(kw, (out_dims, hidden_dims), jnp.float32, -bound, bound)
    b = jax.random.uniform(kb, (out_dims,), jnp.float32, -bound, bound)
    params["fc"] = {"w_t": jnp.asarray(w.T), "b": b}
    return params


def pad_params(params, weight_dtype=jnp.float32):
    """One-time (outside the hot path) lane padding of all feature dims to 128.

    Zero-padded weight rows/cols guarantee padded lanes never change real
    outputs.  The Linear bias of BN layers is dropped (cancelled by BN).
    Weights may be stored in bf16 for the v6e/v7x MXU path.
    """
    padded = {"layers": [], "fc": {}}
    for lp in params["layers"]:
        w = lp["w_t"]
        di, do = w.shape
        dip, dop = _round_up(di, LANE), _round_up(do, LANE)
        padded["layers"].append({
            "w": jnp.pad(w, ((0, dip - di), (0, dop - do))).astype(weight_dtype),
            "gamma": jnp.pad(lp["gamma"].reshape(1, do),
                             ((0, 0), (0, dop - do)), constant_values=1.0),
            "beta": jnp.pad(lp["beta"].reshape(1, do), ((0, 0), (0, dop - do))),
        })
    w = params["fc"]["w_t"]
    b = params["fc"]["b"]
    di, do = w.shape
    dip, dop = _round_up(di, LANE), _round_up(do, LANE)
    padded["fc"]["w"] = jnp.pad(w, ((0, dip - di), (0, dop - do))).astype(weight_dtype)
    padded["fc"]["b"] = jnp.pad(b.reshape(1, do), ((0, 0), (0, dop - do)))
    return padded


# ----------------------------------------------------------------------------
# Pure-JAX reference (faithful to the PyTorch module, unpadded, with bias).
# ----------------------------------------------------------------------------
def mlp_reference(x, params):
    lead_shape = x.shape[:-1]
    h = x.reshape(-1, x.shape[-1])
    for lp in params["layers"]:
        y = h @ lp["w_t"] + lp["b"]
        mean = jnp.mean(y, axis=0, keepdims=True)
        var = jnp.mean(jnp.square(y - mean), axis=0, keepdims=True)
        y = (y - mean) / jnp.sqrt(var + BN_EPS)
        y = y * lp["gamma"] + lp["beta"]
        h = jnp.maximum(y, 0.0)
    out = h @ params["fc"]["w_t"] + params["fc"]["b"]
    return out.reshape(lead_shape + (out.shape[-1],))


if __name__ == "__main__":
    # MLP(n_layers=3, in_dims=32, hidden_dims=64, out_dims=16,
    #     use_bn=True, activation='relu', dropout_prob=0.1, norm_type='batch')
    n_layers, in_dims, hidden_dims, out_dims = 3, 32, 64, 16

    key = jax.random.PRNGKey(0)
    key, kx, kp = jax.random.split(key, 3)

    # Input feature matrix [***, D_in] -> use a 3-D input [2, 8, 32].
    x = jax.random.normal(kx, (2, 8, in_dims), jnp.float32)
    params = init_mlp_params(kp, n_layers, in_dims, hidden_dims, out_dims)

    # f32 path (exact module numerics): check against the pure-JAX reference.
    pparams = pad_params(params)
    out = jax.block_until_ready(mlp_forward(x, pparams, out_dims))
    ref = mlp_reference(x, params)
    assert out.shape == (2, 8, out_dims), out.shape
    assert jnp.allclose(out, ref, atol=1e-4, rtol=1e-4), "mismatch vs reference"

    # bf16 MXU path (v6e/v7x knob; epilogue stays f32): smoke-test it runs.
    pparams_bf16 = pad_params(params, weight_dtype=jnp.bfloat16)
    out_bf16 = jax.block_until_ready(
        mlp_forward(x, pparams_bf16, out_dims, matmul_dtype=jnp.bfloat16))
    assert out_bf16.shape == out.shape
    assert bool(jnp.isfinite(out_bf16).all())

    print("KERNEL_OK")
</pallas_src>

<mosaic_0001>
module attributes {stable_mosaic.version = 11 : i64} {
  func.func @kernel(%arg0: memref<16x128xf32, #tpu.memory_space<vmem>>, %arg1: memref<128x128xf32, #tpu.memory_space<vmem>>, %arg2: memref<1x128xf32, #tpu.memory_space<vmem>>, %arg3: memref<1x128xf32, #tpu.memory_space<vmem>>, %arg4: memref<128x128xf32, #tpu.memory_space<vmem>>, %arg5: memref<1x128xf32, #tpu.memory_space<vmem>>, %arg6: memref<1x128xf32, #tpu.memory_space<vmem>>, %arg7: memref<128x128xf32, #tpu.memory_space<vmem>>, %arg8: memref<1x128xf32, #tpu.memory_space<vmem>>, %arg9: memref<16x128xf32, #tpu.memory_space<vmem>>) attributes {dimension_semantics = [], scalar_prefetch = 0 : i64, scratch_operands = 0 : i64, tpu.core_type = #tpu.core_type<tc>} {
    %c0 = arith.constant 0 : index
    %c0_0 = arith.constant 0 : index
    %0 = vector.load %arg0[%c0, %c0_0] : memref<16x128xf32, #tpu.memory_space<vmem>>, vector<16x128xf32>
    %c0_1 = arith.constant 0 : index
    %c0_2 = arith.constant 0 : index
    %1 = vector.load %arg1[%c0_1, %c0_2] : memref<128x128xf32, #tpu.memory_space<vmem>>, vector<128x128xf32>
    %c0_3 = arith.constant 0 : index
    %c0_4 = arith.constant 0 : index
    %2 = vector.load %arg2[%c0_3, %c0_4] : memref<1x128xf32, #tpu.memory_space<vmem>>, vector<1x128xf32>
    %c0_5 = arith.constant 0 : index
    %c0_6 = arith.constant 0 : index
    %3 = vector.load %arg3[%c0_5, %c0_6] : memref<1x128xf32, #tpu.memory_space<vmem>>, vector<1x128xf32>
    %cst = arith.constant dense<0.000000e+00> : vector<16x128xf32>
    %4 = tpu.matmul %0, %1, %cst {dimension_numbers = #tpu.dot_dimension_numbers<[1], [0], [0], [1], [0, 0, 1, 1], [], []>} : vector<16x128xf32>, vector<128x128xf32>, vector<16x128xf32> -> vector<16x128xf32>
    %cst_7 = arith.constant dense<0.000000e+00> : vector<128xf32>
    %5 = vector.multi_reduction <add>, %4, %cst_7 [0] : vector<16x128xf32> to vector<128xf32>
    %6 = vector.shape_cast %5 : vector<128xf32> to vector<1x128xf32>
    %cst_8 = arith.constant 6.250000e-02 : f32
    %7 = vector.broadcast %cst_8 : f32 to vector<1x128xf32>
    %8 = arith.mulf %6, %7 : vector<1x128xf32>
    %9 = vector.broadcast %8 : vector<1x128xf32> to vector<16x128xf32>
    %10 = arith.subf %4, %9 : vector<16x128xf32>
    %11 = arith.mulf %10, %10 : vector<16x128xf32>
    %cst_9 = arith.constant dense<0.000000e+00> : vector<128xf32>
    %12 = vector.multi_reduction <add>, %11, %cst_9 [0] : vector<16x128xf32> to vector<128xf32>
    %13 = vector.shape_cast %12 : vector<128xf32> to vector<1x128xf32>
    %cst_10 = arith.constant 6.250000e-02 : f32
    %14 = vector.broadcast %cst_10 : f32 to vector<1x128xf32>
    %15 = arith.mulf %13, %14 : vector<1x128xf32>
    %cst_11 = arith.constant 9.99999974E-6 : f32
    %16 = vector.broadcast %cst_11 : f32 to vector<1x128xf32>
    %17 = arith.addf %15, %16 : vector<1x128xf32>
    %18 = math.rsqrt %17 : vector<1x128xf32>
    %19 = arith.mulf %18, %2 : vector<1x128xf32>
    %20 = arith.mulf %8, %19 : vector<1x128xf32>
    %21 = arith.subf %3, %20 : vector<1x128xf32>
    %22 = vector.broadcast %19 : vector<1x128xf32> to vector<16x128xf32>
    %23 = arith.mulf %4, %22 : vector<16x128xf32>
    %24 = vector.broadcast %21 : vector<1x128xf32> to vector<16x128xf32>
    %25 = arith.addf %23, %24 : vector<16x128xf32>
    %cst_12 = arith.constant 0.000000e+00 : f32
    %26 = vector.broadcast %cst_12 : f32 to vector<16x128xf32>
    %27 = arith.maximumf %25, %26 : vector<16x128xf32>
    %c0_13 = arith.constant 0 : index
    %c0_14 = arith.constant 0 : index
    %28 = vector.load %arg4[%c0_13, %c0_14] : memref<128x128xf32, #tpu.memory_space<vmem>>, vector<128x128xf32>
    %c0_15 = arith.constant 0 : index
    %c0_16 = arith.constant 0 : index
    %29 = vector.load %arg5[%c0_15, %c0_16] : memref<1x128xf32, #tpu.memory_space<vmem>>, vector<1x128xf32>
    %c0_17 = arith.constant 0 : index
    %c0_18 = arith.constant 0 : index
    %30 = vector.load %arg6[%c0_17, %c0_18] : memref<1x128xf32, #tpu.memory_space<vmem>>, vector<1x128xf32>
    %cst_19 = arith.constant dense<0.000000e+00> : vector<16x128xf32>
    %31 = tpu.matmul %27, %28, %cst_19 {dimension_numbers = #tpu.dot_dimension_numbers<[1], [0], [0], [1], [0, 0, 1, 1], [], []>} : vector<16x128xf32>, vector<128x128xf32>, vector<16x128xf32> -> vector<16x128xf32>
    %cst_20 = arith.constant dense<0.000000e+00> : vector<128xf32>
    %32 = vector.multi_reduction <add>, %31, %cst_20 [0] : vector<16x128xf32> to vector<128xf32>
    %33 = vector.shape_cast %32 : vector<128xf32> to vector<1x128xf32>
    %cst_21 = arith.constant 6.250000e-02 : f32
    %34 = vector.broadcast %cst_21 : f32 to vector<1x128xf32>
    %35 = arith.mulf %33, %34 : vector<1x128xf32>
    %36 = vector.broadcast %35 : vector<1x128xf32> to vector<16x128xf32>
    %37 = arith.subf %31, %36 : vector<16x128xf32>
    %38 = arith.mulf %37, %37 : vector<16x128xf32>
    %cst_22 = arith.constant dense<0.000000e+00> : vector<128xf32>
    %39 = vector.multi_reduction <add>, %38, %cst_22 [0] : vector<16x128xf32> to vector<128xf32>
    %40 = vector.shape_cast %39 : vector<128xf32> to vector<1x128xf32>
    %cst_23 = arith.constant 6.250000e-02 : f32
    %41 = vector.broadcast %cst_23 : f32 to vector<1x128xf32>
    %42 = arith.mulf %40, %41 : vector<1x128xf32>
    %cst_24 = arith.constant 9.99999974E-6 : f32
    %43 = vector.broadcast %cst_24 : f32 to vector<1x128xf32>
    %44 = arith.addf %42, %43 : vector<1x128xf32>
    %45 = math.rsqrt %44 : vector<1x128xf32>
    %46 = arith.mulf %45, %29 : vector<1x128xf32>
    %47 = arith.mulf %35, %46 : vector<1x128xf32>
    %48 = arith.subf %30, %47 : vector<1x128xf32>
    %49 = vector.broadcast %46 : vector<1x128xf32> to vector<16x128xf32>
    %50 = arith.mulf %31, %49 : vector<16x128xf32>
    %51 = vector.broadcast %48 : vector<1x128xf32> to vector<16x128xf32>
    %52 = arith.addf %50, %51 : vector<16x128xf32>
    %cst_25 = arith.constant 0.000000e+00 : f32
    %53 = vector.broadcast %cst_25 : f32 to vector<16x128xf32>
    %54 = arith.maximumf %52, %53 : vector<16x128xf32>
    %c0_26 = arith.constant 0 : index
    %c0_27 = arith.constant 0 : index
    %55 = vector.load %arg7[%c0_26, %c0_27] : memref<128x128xf32, #tpu.memory_space<vmem>>, vector<128x128xf32>
    %c0_28 = arith.constant 0 : index
    %c0_29 = arith.constant 0 : index
    %56 = vector.load %arg8[%c0_28, %c0_29] : memref<1x128xf32, #tpu.memory_space<vmem>>, vector<1x128xf32>
    %cst_30 = arith.constant dense<0.000000e+00> : vector<16x128xf32>
    %57 = tpu.matmul %54, %55, %cst_30 {dimension_numbers = #tpu.dot_dimension_numbers<[1], [0], [0], [1], [0, 0, 1, 1], [], []>} : vector<16x128xf32>, vector<128x128xf32>, vector<16x128xf32> -> vector<16x128xf32>
    %58 = vector.broadcast %56 : vector<1x128xf32> to vector<16x128xf32>
    %59 = arith.addf %57, %58 : vector<16x128xf32>
    %c0_31 = arith.constant 0 : index
    %c0_32 = arith.constant 0 : index
    %60 = vector.load %arg9[%c0_31, %c0_32] : memref<16x128xf32, #tpu.memory_space<vmem>>, vector<16x128xf32>
    tpu.vector_store %arg9[%c0_31, %c0_32], %59 {strides = array<i32>} : memref<16x128xf32, #tpu.memory_space<vmem>>, vector<16x128xf32>,
    return
  }
}

</mosaic_0001>

<bundles_post_ra>
// kernel: mlp_forward.1
= control target key start
LH: loop header
LB: loop body
LE: loop exit
PB: predicated region body
PF: predicated region fallthrough
CT: control target
= control target key end

     0   :  { %14 = vsyncpa [#allocation3], 0  ;;  %s779_s0 = inlined_call_operand.vmem [shape: f32[16,128], index: 0, kind: input, shape index: {}]   ;;  %s780_s1 = inlined_call_operand.hbm [shape: f32[128,128], index: 1, kind: input, shape index: {}]   ;;  %s781_s2 = inlined_call_operand.vmem [shape: f32[1,128], index: 2, kind: input, shape index: {}]   ;;  %s782_s3 = inlined_call_operand.vmem [shape: f32[1,128], index: 3, kind: input, shape index: {}]   ;;  %s783_s4 = inlined_call_operand.hbm [shape: f32[128,128], index: 4, kind: input, shape index: {}]   ;;  %s784_s5 = inlined_call_operand.vmem [shape: f32[1,128], index: 5, kind: input, shape index: {}]   ;;  %s785_s6 = inlined_call_operand.vmem [shape: f32[1,128], index: 6, kind: input, shape index: {}]   ;;  %s786_s7 = inlined_call_operand.hbm [shape: f32[128,128], index: 7, kind: input, shape index: {}]   ;;  %s787_s8 = inlined_call_operand.vmem [shape: f32[1,128], index: 8, kind: input, shape index: {}]   ;;  %s788_s9 = inlined_call_operand.vmem [shape: f32[16,128], index: 9, kind: output, shape index: {}]  }
   0x1   :  { %15 = vsyncpa [#allocation5], 0  ;;  %s682_s30 = smov [#allocation4]   ;;  %s683_s11 = smov [#allocation2]  }
   0x2   :  { %s39_s10 = sshll.u32 %s682_s30, 4  ;;  %s23_s12 = sshll.u32 %s683_s11, 4  ;;  %s40_s10 = int_to_ptr.vmem [resolvable:$true] %s39_s10  ;;  %s24_s12 = int_to_ptr.vmem [resolvable:$true] %s23_s12 }
   0x3   :  { %s626_s13 = scalar_lea.vmem %s40_s10, 2048  ;;  %p631_p1 = scmp.lt.s32.totalorder %s40_s10, %s40_s10 }
   0x4   :  { %p627_p0 = scmp.ne.s32.totalorder %s40_s10, %s626_s13  ;;  %p632_p2 = scmp.lt.s32.totalorder %s626_s13, %s626_s13 }
   0x6   :  { %p633_p3 = por %p632_p2, %p631_p1 }
   0x8   :  { %p634_p4 = pnand %p633_p3, %p627_p0 }
   0xa   :  { %637 = shalt.err (!%p634_p4)
}
   0xb   :  { %s684_s14 = smov 128   ;;  %s685_s15 = smov 8  }
   0xc   :  { %45 = dma.hbm_to_vmem [thread:$0]  %s783_s4, 2048, %s40_s10, [#allocation5], %s684_s14, %s684_s14, %s685_s15  }
   0xd   :  { %s646_s18 = scalar_lea.vmem %s24_s12, 2048  ;;  %p651_p6 = scmp.lt.s32.totalorder %s24_s12, %s24_s12 }
   0xe   :  { %p647_p5 = scmp.ne.s32.totalorder %s24_s12, %s646_s18  ;;  %p652_p7 = scmp.lt.s32.totalorder %s646_s18, %s646_s18 }
  0x10   :  { %p653_p8 = por %p652_p7, %p651_p6 }
  0x12   :  { %p654_p9 = pnand %p653_p8, %p647_p5 }
  0x14   :  { %657 = shalt.err (!%p654_p9)
}
  0x15   :  { %29 = dma.hbm_to_vmem [thread:$0]  %s780_s1, 2048, %s24_s12, [#allocation3], %s684_s14, %s684_s14, %s685_s15  }
  0x16   :  { %s686_s21 = smov [#allocation6]  }
  0x17   :  { %s55_s22 = sshll.u32 %s686_s21, 4  ;;  %s56_s22 = int_to_ptr.vmem [resolvable:$true] %s55_s22 }
  0x18   :  { %s666_s23 = scalar_lea.vmem %s56_s22, 2048  ;;  %p671_p11 = scmp.lt.s32.totalorder %s56_s22, %s56_s22 }
  0x19   :  { %p667_p10 = scmp.ne.s32.totalorder %s56_s22, %s666_s23  ;;  %p672_p12 = scmp.lt.s32.totalorder %s666_s23, %s666_s23 }
  0x1b   :  { %p673_p13 = por %p672_p12, %p671_p11 }
  0x1d   :  { %p674_p0 = pnand %p673_p13, %p667_p10 }
  0x1f   :  { %677 = shalt.err (!%p674_p0)
}
  0x20   :  { %61 = dma.hbm_to_vmem [thread:$0]  %s786_s7, 2048, %s56_s22, [#allocation5], %s684_s14, %s684_s14, %s685_s15  }
  0x21   :  { %678 = dma.done.wait [#allocation3], 2048  }
  0x22   :  { %679 = vsyncadd [#allocation3], 4294965248 }
  0x23   :  { %680 = dma.done.wait [#allocation5], 4096  }
  0x24   :  { %681 = vsyncadd [#allocation5], 4294963200  ;;  %v90_v0 = vld [vmem:[#allocation2 + $0x78] sm:$0xff]  ;;  %v89_v1 = vld [vmem:[#allocation2 + $0x70] sm:$0xff]  ;;  %v193_v57 = vlaneseq }
  0x25   :  { %504 = vmatprep.subr.mxu0 %v90_v0  ;;  %v88_v2 = vld [vmem:[#allocation2 + $0x68] sm:$0xff]  ;;  %v87_v3 = vld [vmem:[#allocation2 + $0x60] sm:$0xff]  ;;  %v86_v5 = vld [vmem:[#allocation2 + $0x58] sm:$0xff] }
  0x26   :  { %505 = vmatpush3.msra.mxu0 %v90_v0  ;;  %v73_v4 = vld [vmem:[%s779_s0] sm:$0xff]  ;;  %v85_v6 = vld [vmem:[#allocation2 + $0x50] sm:$0xff]  ;;  %v84_v7 = vld [vmem:[#allocation2 + $0x48] sm:$0xff]  ;;  %v194_v58 = vshrl.u32 %v193_v57, 7 }
  0x27   :  { %506 = vmatprep.subr.mxu0 %v89_v1  ;;  %536 = vmatprep.mubr.f32.mxu0 %v73_v4  ;;  %v83_v8 = vld [vmem:[#allocation2 + $0x40] sm:$0xff]  ;;  %v82_v9 = vld [vmem:[#allocation2 + $0x38] sm:$0xff]  ;;  %v81_v10 = vld [vmem:[#allocation2 + $0x30] sm:$0xff] }
  0x28   :  { %507 = vmatpush3.msra.mxu0 %v89_v1  ;;  %v80_v11 = vld [vmem:[#allocation2 + $0x28] sm:$0xff]  ;;  %v79_v12 = vld [vmem:[#allocation2 + $0x20] sm:$0xff]  ;;  %v78_v13 = vld [vmem:[#allocation2 + $0x18] sm:$0xff]  ;;  %v755_v60 = vsub.s32 0, %v194_v58 }
  0x29   :  { %508 = vmatprep.subr.mxu0 %v88_v2  ;;  %v77_v14 = vld [vmem:[#allocation2 + $0x10] sm:$0xff]  ;;  %v76_v15 = vld [vmem:[#allocation2 + $0x8] sm:$0xff]  ;;  %v75_v16 = vld [vmem:[#allocation2] sm:$0xff] }
  0x2a   :  { %509 = vmatpush3.msra.mxu0 %v88_v2  ;;  %v74_v17 = vld [vmem:[%s779_s0 + $0x8] sm:$0xff]  ;;  %v224_v18 = vld [vmem:[#allocation4 + $0x78] sm:$0xff]  ;;  %v223_v19 = vld [vmem:[#allocation4 + $0x70] sm:$0xff] }
  0x2b   :  { %510 = vmatprep.subr.mxu0 %v87_v3  ;;  %539 = vmatprep.subr.mxu1 %v224_v18  ;;  %v222_v20 = vld [vmem:[#allocation4 + $0x68] sm:$0xff]  ;;  %v221_v21 = vld [vmem:[#allocation4 + $0x60] sm:$0xff]  ;;  %v220_v22 = vld [vmem:[#allocation4 + $0x58] sm:$0xff] }
  0x2c   :  { %511 = vmatpush3.msra.mxu0 %v87_v3  ;;  %540 = vmatpush3.msra.mxu1 %v224_v18  ;;  %v219_v23 = vld [vmem:[#allocation4 + $0x50] sm:$0xff]  ;;  %v218_v24 = vld [vmem:[#allocation4 + $0x48] sm:$0xff]  ;;  %v217_v25 = vld [vmem:[#allocation4 + $0x40] sm:$0xff] }
  0x2d   :  { %512 = vmatprep.subr.mxu0 %v86_v5  ;;  %541 = vmatprep.subr.mxu1 %v223_v19  ;;  %v216_v26 = vld [vmem:[#allocation4 + $0x38] sm:$0xff]  ;;  %v215_v27 = vld [vmem:[#allocation4 + $0x30] sm:$0xff]  ;;  %v214_v28 = vld [vmem:[#allocation4 + $0x28] sm:$0xff] }
  0x2e   :  { %513 = vmatpush3.msra.mxu0 %v86_v5  ;;  %542 = vmatpush3.msra.mxu1 %v223_v19  ;;  %v213_v29 = vld [vmem:[#allocation4 + $0x20] sm:$0xff]  ;;  %v212_v30 = vld [vmem:[#allocation4 + $0x18] sm:$0xff]  ;;  %v211_v31 = vld [vmem:[#allocation4 + $0x10] sm:$0xff] }
  0x2f   :  { %514 = vmatprep.subr.mxu0 %v85_v6  ;;  %543 = vmatprep.subr.mxu1 %v222_v20  ;;  %v210_v32 = vld [vmem:[#allocation4 + $0x8] sm:$0xff]  ;;  %v209_v33 = vld [vmem:[#allocation4] sm:$0xff]  ;;  %v350_v18 = vld [vmem:[#allocation6 + $0x38] sm:$0xff] }
  0x30   :  { %515 = vmatpush3.msra.mxu0 %v85_v6  ;;  %544 = vmatpush3.msra.mxu1 %v222_v20  ;;  %v91_v59 = vld [vmem:[%s781_s2] sm:$0x1]  ;;  %v349_v19 = vld [vmem:[#allocation6 + $0x30] sm:$0xff]  ;;  %v348_v20 = vld [vmem:[#allocation6 + $0x28] sm:$0xff] }
  0x31   :  { %516 = vmatprep.subr.mxu0 %v84_v7  ;;  %545 = vmatprep.subr.mxu1 %v221_v21  ;;  %v92_v63 = vld [vmem:[%s782_s3] sm:$0x1] }
  0x32   :  { %517 = vmatpush3.msra.mxu0 %v84_v7  ;;  %546 = vmatpush3.msra.mxu1 %v221_v21  ;;  %v347_v21 = vld [vmem:[#allocation6 + $0x20] sm:$0xff] }
  0x33   :  { %518 = vmatprep.subr.mxu0 %v83_v8  ;;  %547 = vmatprep.subr.mxu1 %v220_v22 }
  0x34   :  { %519 = vmatpush3.msra.mxu0 %v83_v8  ;;  %548 = vmatpush3.msra.mxu1 %v220_v22  ;;  %v346_v22 = vld [vmem:[#allocation6 + $0x18] sm:$0xff] }
  0x35   :  { %520 = vmatprep.subr.mxu0 %v82_v9  ;;  %549 = vmatprep.subr.mxu1 %v219_v23 }
  0x36   :  { %521 = vmatpush3.msra.mxu0 %v82_v9  ;;  %550 = vmatpush3.msra.mxu1 %v219_v23  ;;  %v345_v23 = vld [vmem:[#allocation6 + $0x10] sm:$0xff] }
  0x37   :  { %522 = vmatprep.subr.mxu0 %v81_v10  ;;  %551 = vmatprep.subr.mxu1 %v218_v24 }
  0x38   :  { %523 = vmatpush3.msra.mxu0 %v81_v10  ;;  %552 = vmatpush3.msra.mxu1 %v218_v24  ;;  %v358_v10 = vld [vmem:[#allocation6 + $0x78] sm:$0xff]  ;;  %v344_v24 = vld [vmem:[#allocation6 + $0x8] sm:$0xff] }
  0x39   :  { %524 = vmatprep.subr.mxu0 %v80_v11  ;;  %553 = vmatprep.subr.mxu1 %v217_v25 }
  0x3a   :  { %525 = vmatpush3.msra.mxu0 %v80_v11  ;;  %554 = vmatpush3.msra.mxu1 %v217_v25  ;;  %v357_v11 = vld [vmem:[#allocation6 + $0x70] sm:$0xff]  ;;  %v343_v25 = vld [vmem:[#allocation6] sm:$0xff] }
  0x3b   :  { %526 = vmatprep.subr.mxu0 %v79_v12  ;;  %555 = vmatprep.subr.mxu1 %v216_v26 }
  0x3c   :  { %527 = vmatpush3.msra.mxu0 %v79_v12  ;;  %556 = vmatpush3.msra.mxu1 %v216_v26  ;;  %v356_v12 = vld [vmem:[#allocation6 + $0x68] sm:$0xff] }
  0x3d   :  { %528 = vmatprep.subr.mxu0 %v78_v13  ;;  %557 = vmatprep.subr.mxu1 %v215_v27 }
  0x3e   :  { %529 = vmatpush3.msra.mxu0 %v78_v13  ;;  %558 = vmatpush3.msra.mxu1 %v215_v27  ;;  %v355_v13 = vld [vmem:[#allocation6 + $0x60] sm:$0xff] }
  0x3f   :  { %530 = vmatprep.subr.mxu0 %v77_v14  ;;  %559 = vmatprep.subr.mxu1 %v214_v28 }
  0x40   :  { %531 = vmatpush3.msra.mxu0 %v77_v14  ;;  %560 = vmatpush3.msra.mxu1 %v214_v28  ;;  %v354_v14 = vld [vmem:[#allocation6 + $0x58] sm:$0xff] }
  0x41   :  { %532 = vmatprep.subr.mxu0 %v76_v15  ;;  %561 = vmatprep.subr.mxu1 %v213_v29 }
  0x42   :  { %533 = vmatpush3.msra.mxu0 %v76_v15  ;;  %562 = vmatpush3.msra.mxu1 %v213_v29  ;;  %v353_v15 = vld [vmem:[#allocation6 + $0x50] sm:$0xff] }
  0x43   :  { %534 = vmatprep.subr.mxu0 %v75_v16  ;;  %563 = vmatprep.subr.mxu1 %v212_v30 }
  0x44   :  { %535 = vmatpush3.msra.mxu0 %v75_v16  ;;  %564 = vmatpush3.msra.mxu1 %v212_v30  ;;  %v352_v16 = vld [vmem:[#allocation6 + $0x48] sm:$0xff] }
  0x45   :  { %537 = vmatmul.mubr.f32.vlgmr.msra.gmra.mxu0 %v74_v17  ;;  %565 = vmatprep.subr.mxu1 %v211_v31  ;;  %v351_v17 = vld [vmem:[#allocation6 + $0x40] sm:$0xff] }
  0x46   :  { %566 = vmatpush3.msra.mxu1 %v211_v31  ;;  %574 = vmatprep.subr.mxu0 %v358_v10 }
  0x47   :  { %567 = vmatprep.subr.mxu1 %v210_v32  ;;  %575 = vmatpush3.msra.mxu0 %v358_v10 }
  0x48   :  { %568 = vmatpush3.msra.mxu1 %v210_v32  ;;  %576 = vmatprep.subr.mxu0 %v357_v11 }
  0x49   :  { %569 = vmatprep.subr.mxu1 %v209_v33  ;;  %577 = vmatpush3.msra.mxu0 %v357_v11 }
  0x4a   :  { %570 = vmatpush3.msra.mxu1 %v209_v33  ;;  %578 = vmatprep.subr.mxu0 %v356_v12 }
  0x4b   :  { %579 = vmatpush3.msra.mxu0 %v356_v12 }
  0x4c   :  { %580 = vmatprep.subr.mxu0 %v355_v13 }
  0x4d   :  { %581 = vmatpush3.msra.mxu0 %v355_v13 }
  0x4e   :  { %582 = vmatprep.subr.mxu0 %v354_v14 }
  0x4f   :  { %583 = vmatpush3.msra.mxu0 %v354_v14 }
  0x50   :  { %584 = vmatprep.subr.mxu0 %v353_v15 }
  0x51   :  { %585 = vmatpush3.msra.mxu0 %v353_v15 }
  0x52   :  { %586 = vmatprep.subr.mxu0 %v352_v16 }
  0x53   :  { %587 = vmatpush3.msra.mxu0 %v352_v16 }
  0x54   :  { %588 = vmatprep.subr.mxu0 %v351_v17 }
  0x55   :  { %589 = vmatpush3.msra.mxu0 %v351_v17 }
  0x56   :  { %590 = vmatprep.subr.mxu0 %v350_v18 }
  0x57   :  { %591 = vmatpush3.msra.mxu0 %v350_v18 }
  0x58   :  { %592 = vmatprep.subr.mxu0 %v349_v19 }
  0x59   :  { %593 = vmatpush3.msra.mxu0 %v349_v19 }
  0x5a   :  { %594 = vmatprep.subr.mxu0 %v348_v20 }
  0x5b   :  { %595 = vmatpush3.msra.mxu0 %v348_v20 }
  0x5c   :  { %596 = vmatprep.subr.mxu0 %v347_v21 }
  0x5d   :  { %597 = vmatpush3.msra.mxu0 %v347_v21 }
  0x5e   :  { %598 = vmatprep.subr.mxu0 %v346_v22 }
  0x5f   :  { %599 = vmatpush3.msra.mxu0 %v346_v22 }
  0x60   :  { %600 = vmatprep.subr.mxu0 %v345_v23 }
  0x61   :  { %601 = vmatpush3.msra.mxu0 %v345_v23 }
  0x62   :  { %602 = vmatprep.subr.mxu0 %v344_v24 }
  0x63   :  { %603 = vmatpush3.msra.mxu0 %v344_v24 }
  0x64   :  { %604 = vmatprep.subr.mxu0 %v343_v25 }
  0x65   :  { %605 = vmatpush3.msra.mxu0 %v343_v25 }
 0x105   :  { %v538_v34 = vpop.f32.mrf.mxu0 }
 0x107   :  { %v159_v35 = vpop.f32.mrf.mxu0 }
 0x108   :  { %v168_v36 = vadd.f32 %v538_v34, %v159_v35 }
 0x10a   :  { %v169_v37 = vrot.slane %v168_v36, 4 }
 0x10c   :  { %v170_v38 = vadd.f32 %v169_v37, %v168_v36 }
 0x10e   :  { %v171_v39 = vrot.slane %v170_v38, 2 }
 0x110   :  { %v172_v40 = vadd.f32 %v171_v39, %v170_v38 }
 0x112   :  { %v173_v41 = vrot.slane %v172_v40, 1 }
 0x114   :  { %v174_v42 = vadd.f32 %v173_v41, %v172_v40 }
 0x116   :  { %v175_v43 = vmul.f32 0.0625, %v174_v42 }
 0x118   :  { %v176_v44 = vsub.f32 %v159_v35, %v175_v43  ;;  %v177_v45 = vsub.f32 %v538_v34, %v175_v43 }
 0x11a   :  { %v178_v46 = vmul.f32 %v176_v44, %v176_v44  ;;  %v179_v47 = vmul.f32 %v177_v45, %v177_v45 }
 0x11c   :  { %v180_v48 = vadd.f32 %v179_v47, %v178_v46 }
 0x11e   :  { %v181_v49 = vrot.slane %v180_v48, 4 }
 0x120   :  { %v182_v50 = vadd.f32 %v181_v49, %v180_v48  ;;  %v225_v49 = vld [vmem:[%s784_s5] sm:$0x1] }
 0x122   :  { %v183_v51 = vrot.slane %v182_v50, 2 }
 0x124   :  { %v184_v52 = vadd.f32 %v183_v51, %v182_v50 }
 0x126   :  { %v185_v53 = vrot.slane %v184_v52, 1 }
 0x128   :  { %v186_v54 = vadd.f32 %v185_v53, %v184_v52  ;;  %v226_v52 = vld [vmem:[%s785_s6] sm:$0x1] }
 0x12a   :  { %v187_v55 = vmul.f32 0.0625, %v186_v54 }
 0x12c   :  { %v188_v56 = vadd.f32 1e-05, %v187_v55 }
 0x12e   :  { %614 = vrsqrt.f32 %v188_v56 }
 0x13b   :  { %v615_v61 = vpop.eup %614 }
 0x13c   :  { %v190_v62 = vmul.f32 %v615_v61, %v91_v59 }
 0x13e   :  { %v191_v0 = vmul.f32 %v190_v62, %v175_v43  ;;  %v196_v1 = vrot.slane %v190_v62, %v755_v60 }
 0x140   :  { %v192_v2 = vsub.f32 %v92_v63, %v191_v0  ;;  %v197_v3 = vmul.f32 %v196_v1, %v159_v35  ;;  %v198_v5 = vmul.f32 %v538_v34, %v196_v1  ;;  %v449_v0 = vld [vmem:[%s787_s8] ss:$0 sm:$0xff] }
 0x142   :  { %v203_v4 = vrot.slane %v192_v2, %v755_v60 }
 0x144   :  { %v205_v6 = vadd.f32 %v203_v4, %v197_v3  ;;  %v206_v7 = vadd.f32 %v203_v4, %v198_v5 }
 0x146   :  { %v207_v8 = vmax.f32 %v205_v6, 0.0  ;;  %v208_v9 = vmax.f32 %v206_v7, 0.0 }
 0x148   :  { %571 = vmatprep.mubr.f32.mxu1 %v207_v8 }
 0x149   :  { %572 = vmatmul.mubr.f32.vlgmr.msra.gmra.mxu1 %v208_v9 }
 0x209   :  { %v573_v26 = vpop.f32.mrf.mxu1 }
 0x20b   :  { %v293_v27 = vpop.f32.mrf.mxu1 }
 0x20c   :  { %v302_v28 = vadd.f32 %v573_v26, %v293_v27 }
 0x20e   :  { %v303_v29 = vrot.slane %v302_v28, 4 }
 0x210   :  { %v304_v30 = vadd.f32 %v303_v29, %v302_v28 }
 0x212   :  { %v305_v31 = vrot.slane %v304_v30, 2 }
 0x214   :  { %v306_v32 = vadd.f32 %v305_v31, %v304_v30 }
 0x216   :  { %v307_v33 = vrot.slane %v306_v32, 1 }
 0x218   :  { %v308_v34 = vadd.f32 %v307_v33, %v306_v32 }
 0x21a   :  { %v309_v35 = vmul.f32 0.0625, %v308_v34 }
 0x21c   :  { %v310_v36 = vsub.f32 %v293_v27, %v309_v35  ;;  %v311_v37 = vsub.f32 %v573_v26, %v309_v35 }
 0x21e   :  { %v312_v38 = vmul.f32 %v310_v36, %v310_v36  ;;  %v313_v39 = vmul.f32 %v311_v37, %v311_v37 }
 0x220   :  { %v314_v40 = vadd.f32 %v313_v39, %v312_v38 }
 0x222   :  { %v315_v41 = vrot.slane %v314_v40, 4 }
 0x224   :  { %v316_v42 = vadd.f32 %v315_v41, %v314_v40 }
 0x226   :  { %v317_v43 = vrot.slane %v316_v42, 2 }
 0x228   :  { %v318_v44 = vadd.f32 %v317_v43, %v316_v42 }
 0x22a   :  { %v319_v45 = vrot.slane %v318_v44, 1 }
 0x22c   :  { %v320_v46 = vadd.f32 %v319_v45, %v318_v44 }
 0x22e   :  { %v321_v47 = vmul.f32 0.0625, %v320_v46 }
 0x230   :  { %v322_v48 = vadd.f32 1e-05, %v321_v47 }
 0x232   :  { %616 = vrsqrt.f32 %v322_v48 }
 0x23f   :  { %v617_v50 = vpop.eup %616 }
 0x240   :  { %v324_v51 = vmul.f32 %v617_v50, %v225_v49 }
 0x242   :  { %v325_v53 = vmul.f32 %v324_v51, %v309_v35  ;;  %v330_v54 = vrot.slane %v324_v51, %v755_v60 }
 0x244   :  { %v326_v55 = vsub.f32 %v226_v52, %v325_v53  ;;  %v331_v56 = vmul.f32 %v330_v54, %v293_v27  ;;  %v332_v57 = vmul.f32 %v573_v26, %v330_v54 }
 0x246   :  { %v337_v58 = vrot.slane %v326_v55, %v755_v60 }
 0x248   :  { %v339_v59 = vadd.f32 %v337_v58, %v331_v56  ;;  %v340_v61 = vadd.f32 %v337_v58, %v332_v57 }
 0x24a   :  { %v341_v62 = vmax.f32 %v339_v59, 0.0  ;;  %v342_v63 = vmax.f32 %v340_v61, 0.0 }
 0x24c   :  { %606 = vmatprep.mubr.f32.mxu0 %v341_v62 }
 0x24d   :  { %607 = vmatmul.mubr.f32.vlgmr.msra.gmra.mxu0 %v342_v63 }
 0x30d   :  { %v608_v1 = vpop.f32.mrf.mxu0 }
 0x30e   :  { %v438_v2 = vadd.f32 %v608_v1, %v449_v0 }
 0x30f   :  { %v432_v3 = vpop.f32.mrf.mxu0 }
 0x310   :  { %442 = vst [vmem:[%s788_s9 + $0x8] sm:$0xff] %v438_v2  ;;  %v433_v4 = vadd.f32 %v449_v0, %v432_v3 }
 0x312   :  { %441 = vst [vmem:[%s788_s9] sm:$0xff] %v433_v4 }
 0x313   :  { %447 = vsyncpa [#allocation3], 1 }
 0x314   :  { %448 = vsyncpa [#allocation5], 1 }

</bundles_post_ra>
